<compile_context>
chip_gen: v6e
topology: v6e:2x2x1
jax: 0.10.0
libtpu: 0.0.40
codegen_flags: <defaults>
</compile_context>

<pallas_src>
import functools

import jax
import jax.numpy as jnp
from jax import lax
from jax.experimental import pallas as pl
from jax.experimental.pallas import tpu as pltpu


def _focal_loss_kernel(alpha, gamma, logits_ref, targets_ref, loss_ref):
    """Per-tile body: computes per-row focal loss for a (tile_n, C) block of logits."""
    x = logits_ref[...].astype(jnp.float32)          # (tile_n, C) — cast in-kernel
    tgt = targets_ref[...]                           # (tile_n, 1) int32
    tn, c = x.shape

    # Numerically stable log-sum-exp along the class (lane) axis.
    m = jnp.max(x, axis=-1, keepdims=True)                                   # (tile_n, 1)
    lse = m + jnp.log(jnp.sum(jnp.exp(x - m), axis=-1, keepdims=True))       # (tile_n, 1)

    # Gather the logit at the target class via a one-hot mask (no dynamic gather on TPU).
    col = lax.broadcasted_iota(jnp.int32, (tn, c), 1)                        # (tile_n, C)
    x_t = jnp.sum(jnp.where(col == tgt, x, 0.0), axis=-1, keepdims=True)     # (tile_n, 1)

    # Per-sample cross entropy (F.cross_entropy, reduction='none', weight=None).
    ce = lse - x_t                                                           # (tile_n, 1)

    # Focal modulation: alpha * (1 - exp(-CE))**gamma * CE
    pt = jnp.exp(-ce)
    u = 1.0 - pt
    if float(gamma) == float(int(gamma)) and int(gamma) >= 0:
        # Integer gamma fast path: plain VPU multiplies instead of EUP pow (log+exp).
        mod = jnp.ones_like(u)
        for _ in range(int(gamma)):
            mod = mod * u
    else:
        mod = u ** jnp.float32(gamma)

    # Per-row losses; partial last block is store-masked by Pallas, so no explicit
    # validity mask is needed (each row's loss depends only on that row).
    loss_ref[...] = alpha * mod * ce


def _round_down(x, m):
    return (x // m) * m


def _pick_tile_n(n, c, itemsize):
    """Pick a batch-tile size that keeps double-buffered VMEM usage well under limits."""
    # Minimum second-minor (sublane) granularity per dtype packing.
    sublane = {4: 8, 2: 16, 1: 32}.get(int(itemsize), 8)
    # Per-row VMEM cost with double-buffering:
    #   logits: 2 * C * itemsize
    #   targets (int32, lane-padded to 128) + per-row f32 output (also lane-padded): 4 * 128 * 4
    budget = 8 * 1024 * 1024  # ~8 MiB: fits v5e 16 MiB scoped default, v7x 64 MiB physical.
    per_row = 2 * c * itemsize + 4 * 128 * 4
    tile = budget // per_row
    tile = max(sublane, min(1024, _round_down(tile, sublane)))
    # Don't tile wider than the batch (rounded down to the sublane granule when possible).
    tile = min(tile, max(sublane, _round_down(n, sublane)))
    return int(tile)


def focal_loss(inputs, targets, alpha=1.0, gamma=2.0, reduction="sum", tile_n=None):
    """inputs: (N, C) float logits (any float dtype); targets: (N,) int class indices.

    Matches FocalLoss.forward with weight=None. reduction in {'sum', 'mean', 'none'}.
    """
    # TODO(synk): per-class `weight` tensor of F.cross_entropy is not implemented (module default is None).
    n, c = inputs.shape
    itemsize = jnp.dtype(inputs.dtype).itemsize
    sublane = {4: 8, 2: 16, 1: 32}.get(int(itemsize), 8)

    if tile_n is None:
        tile_n = _pick_tile_n(n, c, itemsize)
    else:
        tile_n = max(sublane, _round_down(int(tile_n), sublane))
    num_tiles = pl.cdiv(n, tile_n)

    targets2d = targets.astype(jnp.int32).reshape(n, 1)

    kernel = functools.partial(_focal_loss_kernel, float(alpha), float(gamma))

    # HBM-bound kernel: a few VPU ops + one exp per logit element; advise XLA accordingly.
    cost = pl.CostEstimate(
        flops=6 * n * c,
        transcendentals=n * c + 2 * n,                  # row-wise exp over logits + exp/log per row
        bytes_accessed=n * c * int(itemsize) + n * 4 + n * 4,
    )

    per_row = pl.pallas_call(
        kernel,
        out_shape=jax.ShapeDtypeStruct((n, 1), jnp.float32),
        grid=(num_tiles,),
        in_specs=[
            pl.BlockSpec((tile_n, c), lambda i: (i, 0)),   # logits tile (native dtype)
            pl.BlockSpec((tile_n, 1), lambda i: (i, 0)),   # targets tile
        ],
        out_specs=pl.BlockSpec((tile_n, 1), lambda i: (i, 0)),
        compiler_params=pltpu.CompilerParams(
            dimension_semantics=("parallel",),             # batch tiles are independent (megacore)
        ),
        cost_estimate=cost,
    )(inputs, targets2d)

    if reduction == "sum":
        return jnp.sum(per_row)
    elif reduction == "mean":
        return jnp.mean(per_row)
    else:  # 'none'
        return per_row[:, 0]


def _reference_focal_loss(inputs, targets, alpha=1.0, gamma=2.0, reduction="sum"):
    logp = jax.nn.log_softmax(inputs.astype(jnp.float32), axis=-1)
    ce = -jnp.take_along_axis(logp, targets.reshape(-1, 1).astype(jnp.int32), axis=-1)[:, 0]
    pt = jnp.exp(-ce)
    f = alpha * (1.0 - pt) ** gamma * ce
    if reduction == "sum":
        return jnp.sum(f)
    elif reduction == "mean":
        return jnp.mean(f)
    return f


if __name__ == "__main__":
    key = jax.random.PRNGKey(0)
    k1, k2 = jax.random.split(key)

    # Small shapes consistent with the module: batch N=20 (non-multiple of the tile -> exercises
    # partial-block masking), num_classes C=16.
    N, C = 20, 16
    logits = jax.random.normal(k1, (N, C), dtype=jnp.float32) * 2.0
    targets = jax.random.randint(k2, (N,), 0, C, dtype=jnp.int32)

    # f32 path (auto tile; 2 grid steps).
    loss = focal_loss(logits, targets, alpha=1.0, gamma=2.0)
    jax.block_until_ready(loss)
    ref = _reference_focal_loss(logits, targets, alpha=1.0, gamma=2.0)
    assert jnp.allclose(loss, ref, rtol=1e-5, atol=1e-5), (loss, ref)

    # Native bf16 path: bf16 is DMA'd as-is and cast to f32 inside the kernel.
    logits_bf16 = logits.astype(jnp.bfloat16)
    loss_bf16 = focal_loss(logits_bf16, targets, alpha=0.25, gamma=2.0)
    jax.block_until_ready(loss_bf16)
    ref_bf16 = _reference_focal_loss(logits_bf16, targets, alpha=0.25, gamma=2.0)
    assert jnp.allclose(loss_bf16, ref_bf16, rtol=1e-4, atol=1e-4), (loss_bf16, ref_bf16)

    print("KERNEL_OK")
</pallas_src>

<mosaic_0001>
module attributes {stable_mosaic.version = 11 : i64} {
  func.func @_focal_loss_kernel(%arg0: i32, %arg1: memref<16x16xf32, #tpu.memory_space<vmem>>, %arg2: memref<16x1xi32, #tpu.memory_space<vmem>>, %arg3: memref<16x1xf32, #tpu.memory_space<vmem>>) attributes {dimension_semantics = [#tpu.dimension_semantics<parallel>], iteration_bounds = array<i64: 2>, scalar_prefetch = 0 : i64, scratch_operands = 0 : i64, tpu.core_type = #tpu.core_type<tc>, window_params = [{transform_indices = @transform_0, window_bounds = array<i64: 16, 16>}, {transform_indices = @transform_1, window_bounds = array<i64: 16, 1>}, {transform_indices = @transform_2, window_bounds = array<i64: 16, 1>}]} {
    %c0 = arith.constant 0 : index
    %c0_0 = arith.constant 0 : index
    %0 = vector.load %arg1[%c0, %c0_0] : memref<16x16xf32, #tpu.memory_space<vmem>>, vector<16x16xf32>
    %c0_1 = arith.constant 0 : index
    %c0_2 = arith.constant 0 : index
    %1 = vector.load %arg2[%c0_1, %c0_2] : memref<16x1xi32, #tpu.memory_space<vmem>>, vector<16x1xi32>
    %cst = arith.constant dense<0xFF800000> : vector<16xf32>
    %2 = vector.multi_reduction <maximumf>, %0, %cst [1] : vector<16x16xf32> to vector<16xf32>
    %3 = vector.shape_cast %2 : vector<16xf32> to vector<16x1xf32>
    %4 = vector.broadcast %3 : vector<16x1xf32> to vector<16x16xf32>
    %5 = arith.subf %0, %4 : vector<16x16xf32>
    %6 = math.exp %5 : vector<16x16xf32>
    %cst_3 = arith.constant dense<0.000000e+00> : vector<16xf32>
    %7 = vector.multi_reduction <add>, %6, %cst_3 [1] : vector<16x16xf32> to vector<16xf32>
    %8 = vector.shape_cast %7 : vector<16xf32> to vector<16x1xf32>
    %9 = math.log %8 : vector<16x1xf32>
    %10 = arith.addf %3, %9 : vector<16x1xf32>
    %11 = tpu.iota {dimensions = array<i32: 1>} : vector<16x16xi32>
    %12 = vector.broadcast %1 : vector<16x1xi32> to vector<16x16xi32>
    %13 = arith.cmpi eq, %11, %12 : vector<16x16xi32>
    %cst_4 = arith.constant 0.000000e+00 : f32
    %14 = vector.broadcast %cst_4 : f32 to vector<16x16xf32>
    %15 = arith.select %13, %0, %14 : vector<16x16xi1>, vector<16x16xf32>
    %cst_5 = arith.constant dense<0.000000e+00> : vector<16xf32>
    %16 = vector.multi_reduction <add>, %15, %cst_5 [1] : vector<16x16xf32> to vector<16xf32>
    %17 = vector.shape_cast %16 : vector<16xf32> to vector<16x1xf32>
    %18 = arith.subf %10, %17 : vector<16x1xf32>
    %cst_6 = arith.constant 0.000000e+00 : f32
    %19 = vector.broadcast %cst_6 : f32 to vector<16x1xf32>
    %20 = arith.subf %19, %18 : vector<16x1xf32>
    %21 = math.exp %20 : vector<16x1xf32>
    %cst_7 = arith.constant 1.000000e+00 : f32
    %22 = vector.broadcast %cst_7 : f32 to vector<16x1xf32>
    %23 = arith.subf %22, %21 : vector<16x1xf32>
    %cst_8 = arith.constant 1.000000e+00 : f32
    %24 = vector.broadcast %cst_8 : f32 to vector<16x1xf32>
    %25 = arith.mulf %24, %23 : vector<16x1xf32>
    %26 = arith.mulf %25, %23 : vector<16x1xf32>
    %cst_9 = arith.constant 1.000000e+00 : f32
    %27 = vector.broadcast %cst_9 : f32 to vector<16x1xf32>
    %28 = arith.mulf %27, %26 : vector<16x1xf32>
    %29 = arith.mulf %28, %18 : vector<16x1xf32>
    %c0_10 = arith.constant 0 : index
    %c0_11 = arith.constant 0 : index
    %30 = vector.load %arg3[%c0_10, %c0_11] : memref<16x1xf32, #tpu.memory_space<vmem>>, vector<16x1xf32>
    tpu.vector_store %arg3[%c0_10, %c0_11], %29 {strides = array<i32>} : memref<16x1xf32, #tpu.memory_space<vmem>>, vector<16x1xf32>,
    return
  }
  func.func @transform_0(%arg0: i32) -> (i32, i32) {
    %c0_i32 = arith.constant 0 : i32
    %c0_i32_0 = arith.constant 0 : i32
    return %arg0, %c0_i32 : i32, i32
  }
  func.func @transform_1(%arg0: i32) -> (i32, i32) {
    %c0_i32 = arith.constant 0 : i32
    %c0_i32_0 = arith.constant 0 : i32
    return %arg0, %c0_i32 : i32, i32
  }
  func.func @transform_2(%arg0: i32) -> (i32, i32) {
    %c0_i32 = arith.constant 0 : i32
    %c0_i32_0 = arith.constant 0 : i32
    return %arg0, %c0_i32 : i32, i32
  }
}

</mosaic_0001>

<bundles_post_ra>
// kernel: tpu_custom_call.1
= control target key start
LH: loop header
LB: loop body
LE: loop exit
PB: predicated region body
PF: predicated region fallthrough
CT: control target
= control target key end

     0   :  { %s739_s9 = smov 0   ;;  %s741_s10 = smov 0   ;;  %s831_s0 = inlined_call_operand.vmem [shape: f32[20,16], index: 0, kind: input, shape index: {}]   ;;  %s832_s1 = inlined_call_operand.vmem [shape: s32[20,1], index: 1, kind: input, shape index: {}]   ;;  %s833_s2 = inlined_call_operand.vmem [shape: f32[20,1], index: 2, kind: output, shape index: {}]  }
   0x1   :  { %s743_s11 = smov 0  }
   0x2 LB: > { %s752_s12 = sadd.s32 4294967295, %s689_s11   ;;  %s754_s13 = sadd.s32 1, %s689_s11   ;;  %s689_s11 = sphi %s743_s11, %s837_s11   ;;  %s685_s10 = sphi %s741_s10, %s836_s10   ;;  %s681_s9 = sphi %s739_s9, %s835_s9  }
   0x3   : > { %s68_s14 = ssub.s32 %s689_s11, %s754_s13  ;;  %s71_s15 = sadd.s32 1, %s685_s10 }
   0x4   : > { %p69_p0 = scmp.eq.s32.totalorder %s68_s14, 0  ;;  %p81_p1 = scmp.ne.s32.totalorder %s685_s10, %s681_s9 }
   0x5   : > { %p82_p2 = scmp.eq.s32.totalorder %s752_s12, 1  ;;  %p506_p3 = scmp.ge.s32.totalorder %s689_s11, 1 }
   0x6   : > { %s762_s16 = scalar_select %p69_p0, %s685_s10, %s71_s15  }
   0x7   : > { %p764_p4 = por %p82_p2, %p81_p1  ;;  %p140_p5 = scmp.lt.s32.totalorder %s689_s11, 3 }
   0x9   : > { %p141_p6 = pnand %p506_p3, %p140_p5 }
   0xa   : > { %s769_s18 = sshll.u32 (!%p141_p6), %s752_s12, 1  ;;  %s171_s27 = sand.u32 (!%p141_p6), 1, %s681_s9  }
   0xb   : > { %144 = sbr.rel (%p141_p6) target bundleno = 405 (0x195), region = 28  ;;  %p179_p7 = scmp.lt.s32.totalorder (!%p141_p6), %s769_s18, 2 }
   0xc   : > { %s507_s28 = sshll.u32 (!%p141_p6), %s171_s27, 4 }
   0xd   : > { %s786_s29 = scalar_lea.vmem (!%p141_p6), [#allocation2], %s507_s28  }
  0x10   : > { %v723_v0 = vmov 0   ;;  %s180_s19 = scalar_select %p179_p7, %s769_s18, 2  ;;  %vm211_vm0 = vcmask 130048   ;;  %v236_v13 = vlaneseq  ;;  %vm268_vm3 = vcmask 7168  }
  0x11   : > { %621 = vset.pattern.permute.xlu1 %v723_v0  ;;  %622 = vset.pattern.permute.xlu0 %v723_v0  ;;  %s279_s30 = ssub.s32 (%p764_p4), 3, %s769_s18  ;;  %s529_s3 = sshll.u32 (%p764_p4), %s752_s12, 4 }
  0x12   : > { %s509_s20 = sshll.u32 %s180_s19, 3  ;;  %v237_v15 = vand.u32 127, %v236_v13  ;;  %p280_p8 = scmp.lt.s32.totalorder (%p764_p4), %s279_s30, 2 }
  0x13   : > { %s182_s23 = scalar_lea.vmem %s831_s0, %s509_s20  ;;  %s196_s26 = scalar_lea.vmem %s832_s1, %s509_s20 }
  0x14   : > { %v207_v1 = vld [vmem:[%s182_s23] sm:$0xff]  ;;  %v208_v2 = vld [vmem:[%s182_s23 + $0x8] sm:$0xff]  ;;  %s797_s6 = scalar_lea.vmem (%p764_p4), %s833_s2, %s529_s3  }
  0x15   : > { %v209_v3 = vld [vmem:[%s196_s26] sm:$0xff]  ;;  %v212_v4 = vsel %vm211_vm0, %v207_v1, -inf  ;;  %v210_v5 = vld [vmem:[%s196_s26 + $0x8] sm:$0xff]  ;;  %v215_v6 = vsel %vm211_vm0, %v208_v2, -inf }
  0x16   : > { %239 = vperm.xlu1 %621, %v209_v3   ;;  %213 = vmax.xlane.f32.xlu0 %v212_v4 }
  0x1a   : > { %242 = vperm.xlu1 %621, %v210_v5   ;;  %216 = vmax.xlane.f32.xlu0 %v215_v6 }
  0x91   : > { %v240_v14 = vpop.permute.xlu1 %239 }
  0x92   : > { %vm244_vm1 = vcmp.eq.s32.totalorder %v237_v15, %v240_v14 }
  0x93   : > { %v246_v18 = vsel %vm244_vm1, %v207_v1, 0.0 }
  0x94   : > { %v248_v20 = vsel %vm211_vm0, %v246_v18, 0.0 }
  0x95   : > { %v243_v16 = vpop.permute.xlu1 %242 }
  0x96   : > { %vm245_vm2 = vcmp.eq.s32.totalorder %v237_v15, %v243_v16 }
  0x97   : > { %v247_v22 = vsel %vm245_vm2, %v208_v2, 0.0 }
  0x98   : > { %v251_v24 = vsel %vm211_vm0, %v247_v22, 0.0 }
  0x9f   : > { %v214_v7 = vpop.xlane.xlu0 %213 }
  0xa0   : > { %v218_v8 = vsub.f32 %v207_v1, %v214_v7 }
  0xa2   : > { %v220_v9 = vmul.f32 1.442695, %v218_v8 }
  0xa3   : > { %v217_v10 = vpop.xlane.xlu0 %216 }
  0xa4   : > { %623 = vpow2.f32 %v220_v9  ;;  %v219_v11 = vsub.f32 %v208_v2, %v217_v10 }
  0xa6   : > { %v222_v12 = vmul.f32 1.442695, %v219_v11 }
  0xa8   : > { %625 = vpow2.f32 %v222_v12 }
  0xb1   : > { %v624_v17 = vpop.eup %623 }
  0xb2   : > { %v224_v19 = vsel %vm211_vm0, %v624_v17, 0.0 }
  0xb3   : > { %225 = vadd.xlane.f32.xlu0 %v224_v19 }
  0xb5   : > { %v626_v21 = vpop.eup %625 }
  0xb6   : > { %v227_v23 = vsel %vm211_vm0, %v626_v21, 0.0 }
  0xb7   : > { %228 = vadd.xlane.f32.xlu1 %v227_v23  ;;  %249 = vadd.xlane.f32.xlu0 %v248_v20 }
  0xbb   : > { %252 = vadd.xlane.f32.xlu0 %v251_v24 }
 0x13c   : > { %v226_v25 = vpop.xlane.xlu0 %225 }
 0x13d   : > { %627 = vlog2.f32 %v226_v25 }
 0x140   : > { %v229_v26 = vpop.xlane.xlu1 %228  ;;  %v250_v29 = vpop.xlane.xlu0 %249 }
 0x141   : > { %629 = vlog2.f32 %v229_v26 }
 0x144   : > { %v253_v36 = vpop.xlane.xlu0 %252 }
 0x14a   : > { %v628_v27 = vpop.eup %627 }
 0x14b   : > { %v231_v28 = vmul.f32 0.6931472, %v628_v27 }
 0x14d   : > { %v234_v30 = vadd.f32 %v231_v28, %v214_v7 }
 0x14e   : > { %v630_v31 = vpop.eup %629 }
 0x14f   : > { %v233_v32 = vmul.f32 0.6931472, %v630_v31  ;;  %v254_v33 = vsub.f32 %v234_v30, %v250_v29 }
 0x151   : > { %v256_v34 = vsub.f32 0.0, %v254_v33  ;;  %v235_v35 = vadd.f32 %v233_v32, %v217_v10 }
 0x153   : > { %v258_v37 = vmul.f32 1.442695, %v256_v34  ;;  %v255_v38 = vsub.f32 %v235_v35, %v253_v36 }
 0x155   : > { %631 = vpow2.f32 %v258_v37  ;;  %v257_v39 = vsub.f32 0.0, %v255_v38 }
 0x157   : > { %v260_v40 = vmul.f32 1.442695, %v257_v39 }
 0x159   : > { %633 = vpow2.f32 %v260_v40 }
 0x162   : > { %v632_v41 = vpop.eup %631 }
 0x163   : > { %v262_v42 = vsub.f32 1.0, %v632_v41 }
 0x165   : > { %v264_v43 = vmul.f32 %v262_v42, %v262_v42 }
 0x166   : > { %v634_v44 = vpop.eup %633 }
 0x167   : > { %v266_v45 = vmul.f32 %v264_v43, %v254_v33  ;;  %v263_v46 = vsub.f32 1.0, %v634_v44 }
 0x169   : > { %269 = vst.msk [vmem:[%s786_s29] sm:$0xff] %vm268_vm3, %v266_v45  ;;  %v265_v47 = vmul.f32 %v263_v46, %v263_v46  ;;  %277 = sbr.rel (!%p764_p4) target bundleno = 405 (0x195), region = 32 }
 0x16b   : > { %v267_v48 = vmul.f32 %v265_v47, %v255_v38 }
 0x16d   : > { %270 = vst.msk [vmem:[%s786_s29 + $0x8] sm:$0xff] %vm268_vm3, %v267_v48 }
 0x16e   : > { %s839_s30 = smov (!%p280_p8, %s279_s30), 2 }
 0x16f   : > { %s514_s7 = sshll.u32 %s839_s30, 7 }
 0x170   : > { %p517_p9 = scmp.eq.s32.totalorder %s514_s7, 0 }
 0x171   : > { %s803_s8 = sshrl.u32 (!%p517_p9), %s839_s30, 1 }
 0x172   : > { %288 = sbr.rel (%p517_p9) target bundleno = 405 (0x195), region = 36  ;;  %p518_p10 = scmp.le.s32.totalorder (!%p517_p9), %s803_s8, 0 }
 0x177   : > { %453 = sbr.rel (%p518_p10) target bundleno = 388 (0x184), region = 115  ;;  %s691_s9 = smov (!%p518_p10), %s797_s6  }
 0x178   : > { %s695_s11 = smov (!%p518_p10), %s786_s29   ;;  %s699_s12 = smov (!%p518_p10), 0  }
 0x179   : > { %s703_s14 = smov (!%p518_p10), 0  }
 0x17c LB: >> { %v353_v49 = vld [vmem:[%s697_s11] sm:$0xff]  ;;  %v355_v50 = vld [vmem:[%s697_s11 + $0x8] sm:$0xff]  ;;  %s357_s15 = sadd.s32 1, %s701_s12  ;;  %s347_s14 = sadd.s32 1, %s705_s14   ;;  %s705_s14 = sphi %s703_s14, %s347_s14   ;;  %s701_s12 = sphi %s699_s12, %s700_s12   ;;  %s697_s11 = sphi %s695_s11, %s362_s11   ;;  %s693_s9 = sphi %s691_s9, %s363_s9  }
 0x17d   : >> { %354 = vst [vmem:[%s693_s9] sm:$0xff] %v353_v49  ;;  %356 = vst [vmem:[%s693_s9 + $0x8] sm:$0xff] %v355_v50  ;;  %p358_p11 = scmp.ge.s32.totalorder %s357_s15, %s803_s8  ;;  %p346_p12 = scmp.ge.s32.totalorder %s347_s14, %s803_s8 }
 0x17f   : >> { %s841_s15 = smov (%p358_p11, %s357_s15), 0  ;;  %349 = sbr.rel (!%p346_p12) target bundleno = 380 (0x17c), region = 121 }
 0x180   : >> { %s519_s17 = sshll.u32 %s841_s15, 4  ;;  %s700_s12 = smov %s841_s15  }
 0x181   : >> { %s362_s11 = scalar_lea.vmem %s786_s29, %s519_s17 [#allocation2]   ;;  %s363_s9 = scalar_lea.vmem %s797_s6, %s519_s17  }
 0x184 PF: > { %s813_s18 = sand.u32 1, %s839_s30   ;;  %s530_s19 = sshll.u32 %s803_s8, 4 }
 0x185   : > { %s368_s20 = scalar_lea.vmem %s786_s29, %s530_s19 [#allocation2]   ;;  %s370_s21 = scalar_lea.vmem %s797_s6, %s530_s19  }
 0x186   : > { %p524_p13 = scmp.le.s32.totalorder %s813_s18, 0 }
 0x187   : > { %s707_s22 = smov (!%p524_p13), %s370_s21   ;;  %s711_s23 = smov (!%p524_p13), %s368_s20  }
 0x188   : > { %467 = sbr.rel (%p524_p13) target bundleno = 405 (0x195), region = 126  ;;  %s715_s24 = smov (!%p524_p13), 0  }
 0x189   : > { %s719_s25 = smov (!%p524_p13), 0  }
 0x18d LB: >> { %v380_v51 = vld [vmem:[%s713_s23] sm:$0xff]  ;;  %s382_s26 = sadd.s32 1, %s717_s24  ;;  %s374_s25 = sadd.s32 1, %s721_s25   ;;  %s721_s25 = sphi %s719_s25, %s374_s25   ;;  %s717_s24 = sphi %s715_s24, %s716_s24   ;;  %s713_s23 = sphi %s711_s23, %s387_s23   ;;  %s709_s22 = sphi %s707_s22, %s388_s22  }
 0x18e   : >> { %381 = vst [vmem:[%s709_s22] sm:$0xff] %v380_v51  ;;  %p383_p0 = scmp.ge.s32.totalorder %s382_s26, %s813_s18  ;;  %p373_p1 = scmp.ge.s32.totalorder %s374_s25, %s813_s18 }
 0x190   : >> { %s843_s26 = smov (%p383_p0, %s382_s26), 0  ;;  %376 = sbr.rel (!%p373_p1) target bundleno = 397 (0x18d), region = 132 }
 0x191   : >> { %s525_s27 = sshll.u32 %s843_s26, 3  ;;  %s716_s24 = smov %s843_s26  }
 0x192   : >> { %s387_s23 = scalar_lea.vmem %s368_s20, %s525_s27 [#allocation2]   ;;  %s388_s22 = scalar_lea.vmem %s370_s21, %s525_s27  }
 0x195 PF: > { %p9_p2 = scmp.ge.s32.totalorder %s754_s13, 4   ;;  %s835_s9 = smov %s685_s10 }
 0x196   : > { %s836_s10 = smov %s762_s16  ;;  %s837_s11 = smov %s754_s13 }
 0x197   :  { %11 = sbr.rel (!%p9_p2) target bundleno = 2 (0x2), region = 143 }

</bundles_post_ra>
